<compile_context>
chip_gen: v5e
topology: v5e:2x2
jax: 0.10.0
libtpu: 0.0.40
codegen_flags: <defaults>
</compile_context>

<pallas_src>
import jax
import jax.numpy as jnp
from jax.experimental import pallas as pl
from jax.experimental.pallas import tpu as pltpu


# --------------------------------------------------------------------------
# helpers
# --------------------------------------------------------------------------
def _round_up(n: int, m: int) -> int:
    return ((n + m - 1) // m) * m


def _divisors_desc(n: int, multiple: int, cap: int):
    """Divisors of n that are multiples of `multiple` and <= cap, descending."""
    out = []
    d = multiple
    hi = min(n, cap)
    while d <= hi:
        if n % d == 0:
            out.append(d)
        d += multiple
    return sorted(out, reverse=True)


def _vmem_capacity_bytes() -> int:
    try:
        cap = int(pltpu.get_tpu_info().vmem_capacity_bytes)
        if cap > 0:
            return cap
    except Exception:
        pass
    return 64 << 20  # conservative default (v7x per-TensorCore)


def _default_budget(cap: int) -> int:
    # ~75% of capacity, always leaving >= 12 MiB headroom for Mosaic scratch.
    return max(min(cap * 3 // 4, cap - (12 << 20)), 8 << 20)


def _tile_bytes(tm, tn, tk, x_isz, w_isz, out_isz, with_scratch) -> int:
    """Honest double-buffered VMEM footprint of one tile configuration."""
    n = (2 * tm * tk * x_isz        # x tile, double-buffered
         + 2 * tk * tn * w_isz      # w tile, double-buffered
         + 2 * 8 * tn * 4           # fused bias/hyper slab (fp32)
         + 2 * tm * 128 * 4         # t column: physical (tm, 128) lane footprint
         + 2 * tm * tn * out_isz)   # output tile, double-buffered
    if with_scratch:
        n += tm * tn * 4            # fp32 accumulator scratch
    return n


def _select_tiles(Bp, Kp, Np, x_isz, w_isz, out_isz, out_is_f32, budget):
    """Returns (TM, TN, TK). TK == Kp means a 2-D grid with no reduction axis."""
    tm_cands = _divisors_desc(Bp, 8, 1024) or [Bp]
    tn_cands = _divisors_desc(Np, 128, 2048) or [Np]

    def adjust_tn(tm, tn):
        # Keep >= 2 blocks on a "parallel" axis when the batch is one tile,
        # so both v7x TensorCores get work (harmless on v5e/v6e).
        if Bp // tm == 1 and Np // tn == 1:
            for cand in tn_cands:
                if cand < tn:
                    return cand
        return tn

    # 1) Full-K: 2-D grid, largest batch tile (minimizes W re-streaming),
    #    then largest lane-dense output tile.
    for tm in tm_cands:
        for tn in tn_cands:
            if _tile_bytes(tm, tn, Kp, x_isz, w_isz, out_isz, False) <= budget:
                return tm, adjust_tn(tm, tn), Kp

    # 2) Split-K: prefer TK multiples of 256 (v6e/v7x MXU depth), then 128.
    tk_all = [d for d in _divisors_desc(Kp, 128, Kp) if d != Kp]
    tk_cands = ([d for d in tk_all if d % 256 == 0]
                + [d for d in tk_all if d % 256 != 0]) or [min(Kp, 128)]
    with_scratch = not out_is_f32
    for tm in tm_cands:
        for tk in tk_cands:
            for tn in tn_cands:
                if _tile_bytes(tm, tn, tk, x_isz, w_isz, out_isz,
                               with_scratch) <= budget:
                    return tm, adjust_tn(tm, tn), tk

    # 3) Fallback: smallest tiles (compiler VMEM limit is raised to match).
    return tm_cands[-1], tn_cands[-1], tk_cands[-1]


# --------------------------------------------------------------------------
# kernels
# --------------------------------------------------------------------------
def _squash_fullk_kernel(x_ref, w_ref, vec_ref, t_ref, o_ref):
    # Single-shot: (TM, Kp) @ (Kp, TN), bias add, sigmoid gate, store.
    y = jnp.dot(x_ref[...], w_ref[...], preferred_element_type=jnp.float32)
    y = y + vec_ref[0:1, :]                                   # + bias
    gate = jax.nn.sigmoid(t_ref[...] * vec_ref[1:2, :] + vec_ref[2:3, :])
    o_ref[...] = (y * gate).astype(o_ref.dtype)


def _squash_splitk_f32_kernel(x_ref, w_ref, vec_ref, t_ref, o_ref):
    # fp32 output: accumulate directly in the resident output block.
    k = pl.program_id(2)

    @pl.when(k == 0)
    def _init():
        o_ref[...] = jnp.zeros_like(o_ref)

    o_ref[...] += jnp.dot(x_ref[...], w_ref[...],
                          preferred_element_type=jnp.float32)

    @pl.when(k == pl.num_programs(2) - 1)
    def _finalize():
        gate = jax.nn.sigmoid(t_ref[...] * vec_ref[1:2, :] + vec_ref[2:3, :])
        o_ref[...] = (o_ref[...] + vec_ref[0:1, :]) * gate


def _squash_splitk_kernel(x_ref, w_ref, vec_ref, t_ref, o_ref, acc_ref):
    # Low-precision output: fp32 VMEM scratch accumulator.
    k = pl.program_id(2)

    @pl.when(k == 0)
    def _init():
        acc_ref[...] = jnp.zeros_like(acc_ref)

    acc_ref[...] += jnp.dot(x_ref[...], w_ref[...],
                            preferred_element_type=jnp.float32)

    @pl.when(k == pl.num_programs(2) - 1)
    def _finalize():
        gate = jax.nn.sigmoid(t_ref[...] * vec_ref[1:2, :] + vec_ref[2:3, :])
        o_ref[...] = ((acc_ref[...] + vec_ref[0:1, :]) * gate).astype(o_ref.dtype)


# --------------------------------------------------------------------------
# module wrapper (parameters padded / fused ONCE)
# --------------------------------------------------------------------------
def make_squash_linear(w, b, hw, hb, *, compute_dtype=None, vmem_budget_bytes=None):
    """
    w:  (dim_in, dim_out)   transposed nn.Linear(dim_in, dim_out).weight
    b:  (dim_out,)          its bias
    hw: (dim_out,)          nn.Linear(1, dim_out).weight squeezed
    hb: (dim_out,)          its bias
    compute_dtype: optional dtype (e.g. jnp.bfloat16) for the matmul inputs;
                   accumulation and gate math stay fp32.
    Returns forward(t, x) -> (B, dim_out), jitted.
    """
    dim_in, dim_out = int(w.shape[0]), int(w.shape[1])
    Kp = _round_up(dim_in, 128)
    Np = _round_up(dim_out, 128)

    w_dtype = jnp.dtype(compute_dtype) if compute_dtype is not None else jnp.dtype(w.dtype)

    # Pad W once (zero padding keeps the matmul exact).
    wq = w.astype(w_dtype)
    if (dim_in, dim_out) != (Kp, Np):
        wq = jnp.pad(wq, ((0, Kp - dim_in), (0, Np - dim_out)))

    # Fuse bias / hyper-weight / hyper-bias into one resident (8, Np) fp32 slab.
    vec = jnp.zeros((8, Np), jnp.float32)
    vec = vec.at[0, :dim_out].set(b.astype(jnp.float32))
    vec = vec.at[1, :dim_out].set(hw.astype(jnp.float32))
    vec = vec.at[2, :dim_out].set(hb.astype(jnp.float32))

    cap = _vmem_capacity_bytes()
    budget = int(vmem_budget_bytes) if vmem_budget_bytes is not None else _default_budget(cap)

    def forward(t, x):
        if x.ndim != 2 or x.shape[1] != dim_in:
            raise ValueError(f"x must have shape (B, {dim_in}); got {x.shape}")
        B = int(x.shape[0])
        out_dtype = x.dtype
        out_is_f32 = jnp.dtype(out_dtype) == jnp.dtype(jnp.float32)

        x_dtype = w_dtype if compute_dtype is not None else jnp.dtype(x.dtype)
        x_isz = jnp.dtype(x_dtype).itemsize
        w_isz = jnp.dtype(w_dtype).itemsize
        out_isz = jnp.dtype(out_dtype).itemsize

        Bp = _round_up(B, 8)
        TM, TN, TK = _select_tiles(Bp, Kp, Np, x_isz, w_isz, out_isz,
                                   out_is_f32, budget)

        # ---- pad activations only when needed -----------------------------
        xq = x.astype(x_dtype)
        if (B, dim_in) != (Bp, Kp):
            xq = jnp.pad(xq, ((0, Bp - B), (0, Kp - dim_in)))
        tq = jnp.reshape(t, (-1, 1)).astype(jnp.float32)
        if tq.shape[0] == 1 and B > 1:        # scalar t (ODE-solver style)
            tq = jnp.broadcast_to(tq, (B, 1))
        if tq.shape[0] != B:
            raise ValueError(f"t must have 1 or {B} elements; got {t.shape}")
        if B != Bp:
            tq = jnp.pad(tq, ((0, Bp - B), (0, 0)))

        # ---- grid / specs --------------------------------------------------
        split_k = TK != Kp
        if not split_k:
            grid = (Bp // TM, Np // TN)
            in_specs = [
                pl.BlockSpec((TM, Kp), lambda i, j: (i, 0)),   # x batch tile (full K)
                pl.BlockSpec((Kp, TN), lambda i, j: (0, j)),   # w column tile (full K)
                pl.BlockSpec((8, TN), lambda i, j: (0, j)),    # fused b/hw/hb slab
                pl.BlockSpec((TM, 1), lambda i, j: (i, 0)),    # t column
            ]
            out_spec = pl.BlockSpec((TM, TN), lambda i, j: (i, j))
            kernel = _squash_fullk_kernel
            scratch = []
            dims = ("parallel", "parallel")
        else:
            grid = (Bp // TM, Np // TN, Kp // TK)
            in_specs = [
                pl.BlockSpec((TM, TK), lambda i, j, k: (i, k)),
                pl.BlockSpec((TK, TN), lambda i, j, k: (k, j)),
                pl.BlockSpec((8, TN), lambda i, j, k: (0, j)),
                pl.BlockSpec((TM, 1), lambda i, j, k: (i, 0)),
            ]
            out_spec = pl.BlockSpec((TM, TN), lambda i, j, k: (i, j))
            dims = ("parallel", "parallel", "arbitrary")
            if out_is_f32:
                kernel = _squash_splitk_f32_kernel
                scratch = []
            else:
                kernel = _squash_splitk_kernel
                scratch = [pltpu.VMEM((TM, TN), jnp.float32)]

        needed = _tile_bytes(TM, TN, TK, x_isz, w_isz, out_isz, bool(scratch))
        vmem_limit = int(min(max(needed + (8 << 20), 32 << 20),
                             max(cap - (8 << 20), 32 << 20)))

        n_batch_tiles = Bp // TM
        cost = pl.CostEstimate(
            flops=2 * Bp * Kp * Np,
            transcendentals=Bp * Np,
            bytes_accessed=(Bp * Kp * x_isz                 # x once
                            + n_batch_tiles * Kp * Np * w_isz  # W per batch tile
                            + 8 * Np * 4 + Bp * 4           # vec + t
                            + Bp * Np * out_isz),           # output
        )

        out_padded = pl.pallas_call(
            kernel,
            out_shape=jax.ShapeDtypeStruct((Bp, Np), out_dtype),
            grid_spec=pltpu.PrefetchScalarGridSpec(
                num_scalar_prefetch=0,
                grid=grid,
                in_specs=in_specs,
                out_specs=out_spec,
                scratch_shapes=scratch,
            ),
            compiler_params=pltpu.CompilerParams(
                dimension_semantics=dims,
                vmem_limit_bytes=vmem_limit,
            ),
            cost_estimate=cost,
        )(xq, wq, vec, tq)

        if (Bp, Np) != (B, dim_out):
            return out_padded[:B, :dim_out]
        return out_padded

    return jax.jit(forward)


# --------------------------------------------------------------------------
# self-test
# --------------------------------------------------------------------------
def _ref(t, x, w, b, hw, hb):
    y = jnp.dot(x, w, precision=jax.lax.Precision.HIGHEST) + b[None, :]
    gate = jax.nn.sigmoid(t.reshape(-1, 1) * hw[None, :] + hb[None, :])
    return y * gate


def _run_case(key, B, dim_in, dim_out, **factory_kwargs):
    k = jax.random.split(key, 6)
    bound = 1.0 / (dim_in ** 0.5)
    w = jax.random.uniform(k[0], (dim_in, dim_out), jnp.float32, -bound, bound)
    b = jax.random.uniform(k[1], (dim_out,), jnp.float32, -bound, bound)
    hw = jax.random.uniform(k[2], (dim_out,), jnp.float32, -1.0, 1.0)
    hb = jax.random.uniform(k[3], (dim_out,), jnp.float32, -1.0, 1.0)
    x = jax.random.normal(k[4], (B, dim_in), jnp.float32)
    t = jax.random.uniform(k[5], (B,), jnp.float32)

    fwd = make_squash_linear(w, b, hw, hb, **factory_kwargs)
    out = jax.block_until_ready(fwd(t, x))
    ref = _ref(t, x, w, b, hw, hb)
    assert out.shape == (B, dim_out)
    err = float(jnp.max(jnp.abs(out - ref)))
    assert jnp.allclose(out, ref, atol=1e-4, rtol=1e-4), (
        f"mismatch vs reference at B={B}, dim_in={dim_in}, dim_out={dim_out}, "
        f"max abs err {err}")


if __name__ == "__main__":
    key = jax.random.PRNGKey(0)
    k0, k1, k2 = jax.random.split(key, 3)

    # Small shape matching the module spec (single full-K tile, 2-D grid).
    _run_case(k0, B=8, dim_in=32, dim_out=32)

    # Non-power-of-two batch / K / N: divisor-aware batch tile (TM=264, no
    # over-padding), full-K 2-D grid, padded-and-sliced dim_out.
    _run_case(k1, B=264, dim_in=640, dim_out=144)

    # Force the split-K path (tiny VMEM budget) to exercise the 3-D grid with
    # the resident fp32 output accumulator.
    _run_case(k2, B=264, dim_in=640, dim_out=144, vmem_budget_bytes=512 * 1024)

    print("KERNEL_OK")
</pallas_src>

<mosaic_0001>
module attributes {stable_mosaic.version = 11 : i64} {
  func.func @_squash_fullk_kernel(%arg0: i32, %arg1: i32, %arg2: memref<8x128xf32, #tpu.memory_space<vmem>>, %arg3: memref<128x128xf32, #tpu.memory_space<vmem>>, %arg4: memref<8x128xf32, #tpu.memory_space<vmem>>, %arg5: memref<8x1xf32, #tpu.memory_space<vmem>>, %arg6: memref<8x128xf32, #tpu.memory_space<vmem>>) attributes {dimension_semantics = [#tpu.dimension_semantics<parallel>, #tpu.dimension_semantics<parallel>], iteration_bounds = array<i64: 1, 1>, scalar_prefetch = 0 : i64, scratch_operands = 0 : i64, tpu.core_type = #tpu.core_type<tc>, window_params = [{transform_indices = @transform_0, window_bounds = array<i64: 8, 128>}, {transform_indices = @transform_1, window_bounds = array<i64: 128, 128>}, {transform_indices = @transform_2, window_bounds = array<i64: 8, 128>}, {transform_indices = @transform_3, window_bounds = array<i64: 8, 1>}, {transform_indices = @transform_4, window_bounds = array<i64: 8, 128>}]} {
    %c0 = arith.constant 0 : index
    %c0_0 = arith.constant 0 : index
    %0 = vector.load %arg2[%c0, %c0_0] : memref<8x128xf32, #tpu.memory_space<vmem>>, vector<8x128xf32>
    %c0_1 = arith.constant 0 : index
    %c0_2 = arith.constant 0 : index
    %1 = vector.load %arg3[%c0_1, %c0_2] : memref<128x128xf32, #tpu.memory_space<vmem>>, vector<128x128xf32>
    %cst = arith.constant dense<0.000000e+00> : vector<8x128xf32>
    %2 = tpu.matmul %0, %1, %cst {dimension_numbers = #tpu.dot_dimension_numbers<[1], [0], [0], [1], [0, 0, 1, 1], [], []>} : vector<8x128xf32>, vector<128x128xf32>, vector<8x128xf32> -> vector<8x128xf32>
    %c0_3 = arith.constant 0 : index
    %c0_4 = arith.constant 0 : index
    %3 = vector.load %arg4[%c0_3, %c0_4] : memref<8x128xf32, #tpu.memory_space<vmem>>, vector<1x128xf32>
    %4 = vector.broadcast %3 : vector<1x128xf32> to vector<8x128xf32>
    %5 = arith.addf %2, %4 : vector<8x128xf32>
    %c0_5 = arith.constant 0 : index
    %c0_6 = arith.constant 0 : index
    %6 = vector.load %arg5[%c0_5, %c0_6] : memref<8x1xf32, #tpu.memory_space<vmem>>, vector<8x1xf32>
    %c1 = arith.constant 1 : index
    %c0_7 = arith.constant 0 : index
    %7 = vector.load %arg4[%c1, %c0_7] : memref<8x128xf32, #tpu.memory_space<vmem>>, vector<1x128xf32>
    %8 = vector.broadcast %6 : vector<8x1xf32> to vector<8x128xf32>
    %9 = vector.broadcast %7 : vector<1x128xf32> to vector<8x128xf32>
    %10 = arith.mulf %8, %9 : vector<8x128xf32>
    %c2 = arith.constant 2 : index
    %c0_8 = arith.constant 0 : index
    %11 = vector.load %arg4[%c2, %c0_8] : memref<8x128xf32, #tpu.memory_space<vmem>>, vector<1x128xf32>
    %12 = vector.broadcast %11 : vector<1x128xf32> to vector<8x128xf32>
    %13 = arith.addf %10, %12 : vector<8x128xf32>
    %14 = arith.negf %13 : vector<8x128xf32>
    %15 = math.exp %14 : vector<8x128xf32>
    %cst_9 = arith.constant 1.000000e+00 : f32
    %16 = vector.broadcast %cst_9 : f32 to vector<8x128xf32>
    %17 = arith.addf %16, %15 : vector<8x128xf32>
    %18 = arith.divf %16, %17 : vector<8x128xf32>
    %19 = arith.mulf %5, %18 : vector<8x128xf32>
    %c0_10 = arith.constant 0 : index
    %c0_11 = arith.constant 0 : index
    %20 = vector.load %arg6[%c0_10, %c0_11] : memref<8x128xf32, #tpu.memory_space<vmem>>, vector<8x128xf32>
    tpu.vector_store %arg6[%c0_10, %c0_11], %19 {strides = array<i32>} : memref<8x128xf32, #tpu.memory_space<vmem>>, vector<8x128xf32>,
    return
  }
  func.func @transform_0(%arg0: i32, %arg1: i32) -> (i32, i32) {
    %c0_i32 = arith.constant 0 : i32
    %c0_i32_0 = arith.constant 0 : i32
    return %arg0, %c0_i32 : i32, i32
  }
  func.func @transform_1(%arg0: i32, %arg1: i32) -> (i32, i32) {
    %c0_i32 = arith.constant 0 : i32
    %c0_i32_0 = arith.constant 0 : i32
    return %c0_i32, %arg1 : i32, i32
  }
  func.func @transform_2(%arg0: i32, %arg1: i32) -> (i32, i32) {
    %c0_i32 = arith.constant 0 : i32
    %c0_i32_0 = arith.constant 0 : i32
    return %c0_i32, %arg1 : i32, i32
  }
  func.func @transform_3(%arg0: i32, %arg1: i32) -> (i32, i32) {
    %c0_i32 = arith.constant 0 : i32
    %c0_i32_0 = arith.constant 0 : i32
    return %arg0, %c0_i32 : i32, i32
  }
  func.func @transform_4(%arg0: i32, %arg1: i32) -> (i32, i32) {
    %c0_i32 = arith.constant 0 : i32
    return %arg0, %arg1 : i32, i32
  }
}

</mosaic_0001>

<bundles_post_ra>
// kernel: forward.1
= control target key start
LH: loop header
LB: loop body
LE: loop exit
PB: predicated region body
PF: predicated region fallthrough
CT: control target
= control target key end

     0   :  { %9 = vsyncpa [#allocation3], 0  ;;  %s240_s0 = inlined_call_operand.vmem [shape: f32[8,128], index: 0, kind: input, shape index: {}]   ;;  %s241_s1 = inlined_call_operand.hbm [shape: f32[128,128], index: 1, kind: input, shape index: {}]   ;;  %s242_s2 = inlined_call_operand.vmem [shape: f32[8,128], index: 2, kind: input, shape index: {}]   ;;  %s243_s3 = inlined_call_operand.vmem [shape: f32[8,1], index: 3, kind: input, shape index: {}]   ;;  %s244_s4 = inlined_call_operand.hbm [shape: f32[8,128], index: 4, kind: output, shape index: {}]  }
   0x1   :  { %10 = vsyncpa [#allocation4], 0  ;;  %s17_s17 = sshll.u32 %s241_s1, 4  ;;  %s189_s18 = smov [#allocation2]   ;;  %s18_s17 = int_to_ptr.hbm [resolvable:$true] %s17_s17 }
   0x2   :  { %s19_s19 = sshll.u32 %s189_s18, 4  ;;  %s190_s20 = smov 128   ;;  %s20_s19 = int_to_ptr.vmem [resolvable:$true] %s19_s19 }
   0x3   :  { %s191_s21 = smov 8  }
   0x4   :  { %25 = dma.hbm_to_vmem [thread:$0]  %s18_s17, 2048, %s20_s19, [#allocation3], %s190_s20, %s190_s20, %s191_s21  }
   0x5   :  { %185 = dma.done.wait [#allocation3], 2048  }
   0x6   :  { %186 = vsyncadd [#allocation3], 4294965248  ;;  %v192_v0 = vmov 0   ;;  %v73_v1 = vld [vmem:[%s243_s3] sm:$0xff]  ;;  %v50_v2 = vld [vmem:[#allocation2 + $0x78] sm:$0xff]  ;;  %s193_s29 = smov [#allocation5]  }
   0x7   :  { %129 = vset.pattern.permute.xlu0 %v192_v0  ;;  %v49_v3 = vld [vmem:[#allocation2 + $0x70] sm:$0xff]  ;;  %53 = vmatpush.msra.mxu0 %v50_v2  ;;  %v48_v4 = vld [vmem:[#allocation2 + $0x68] sm:$0xff]  ;;  %v47_v5 = vld [vmem:[#allocation2 + $0x60] sm:$0xff]  ;;  %s111_s30 = sshll.u32 %s193_s29, 4  ;;  %s113_s7 = sshll.u32 %s244_s4, 4  ;;  %s112_s30 = int_to_ptr.vmem [resolvable:$true] %s111_s30  ;;  %s114_s7 = int_to_ptr.hbm [resolvable:$true] %s113_s7 }
   0x8   :  { %77 = vperm.xlu0 %129, %v73_v1   ;;  %v46_v6 = vld [vmem:[#allocation2 + $0x58] sm:$0xff]  ;;  %v45_v7 = vld [vmem:[#allocation2 + $0x50] sm:$0xff]  ;;  %v44_v8 = vld [vmem:[#allocation2 + $0x48] sm:$0xff] }
   0x9   :  { %54 = vmatpush.msra.mxu0 %v49_v3  ;;  %v43_v9 = vld [vmem:[#allocation2 + $0x40] sm:$0xff]  ;;  %v42_v10 = vld [vmem:[#allocation2 + $0x38] sm:$0xff]  ;;  %v41_v11 = vld [vmem:[#allocation2 + $0x30] sm:$0xff] }
   0xa   :  { %v40_v12 = vld [vmem:[#allocation2 + $0x28] sm:$0xff]  ;;  %v39_v13 = vld [vmem:[#allocation2 + $0x20] sm:$0xff]  ;;  %v38_v14 = vld [vmem:[#allocation2 + $0x18] sm:$0xff] }
   0xb   :  { %55 = vmatpush.msra.mxu0 %v48_v4  ;;  %v37_v15 = vld [vmem:[#allocation2 + $0x10] sm:$0xff]  ;;  %v36_v16 = vld [vmem:[#allocation2 + $0x8] sm:$0xff]  ;;  %v35_v17 = vld [vmem:[#allocation2] sm:$0xff] }
   0xc   :  { %v34_v18 = vld [vmem:[%s240_s0] sm:$0xff] }
   0xd   :  { %56 = vmatpush.msra.mxu0 %v47_v5  ;;  %v130_v19 = vld [vmem:[%s242_s2 + $0x1] ss:$0 sm:$0xff]  ;;  %v131_v20 = vld [vmem:[%s242_s2 + $0x2] ss:$0 sm:$0xff]  ;;  %v132_v34 = vld [vmem:[%s242_s2] ss:$0 sm:$0xff] }
   0xf   :  { %57 = vmatpush.msra.mxu0 %v46_v6 }
  0x11   :  { %58 = vmatpush.msra.mxu0 %v45_v7 }
  0x13   :  { %59 = vmatpush.msra.mxu0 %v44_v8 }
  0x15   :  { %60 = vmatpush.msra.mxu0 %v43_v9 }
  0x17   :  { %61 = vmatpush.msra.mxu0 %v42_v10 }
  0x19   :  { %62 = vmatpush.msra.mxu0 %v41_v11 }
  0x1b   :  { %63 = vmatpush.msra.mxu0 %v40_v12 }
  0x1d   :  { %64 = vmatpush.msra.mxu0 %v39_v13 }
  0x1f   :  { %65 = vmatpush.msra.mxu0 %v38_v14 }
  0x21   :  { %66 = vmatpush.msra.mxu0 %v37_v15 }
  0x23   :  { %67 = vmatpush.msra.mxu0 %v36_v16 }
  0x25   :  { %68 = vmatpush.msra.mxu0 %v35_v17 }
  0x26   :  { %69 = vmatmul.f32.vlgmr.msra.gmra.mxu0 %v34_v18 }
  0x7a   :  { %v78_v21 = vpop.permute.xlu0 %77 }
  0x7b   :  { %v81_v22 = vmul.f32 %v130_v19, %v78_v21 }
  0x7d   :  { %v84_v23 = vadd.f32 %v131_v20, %v81_v22 }
  0x7f   :  { %v123_v24 = vmul.f32 -1.442695, %v84_v23 }
  0x81   :  { %133 = vpow2.f32 %v123_v24 }
  0x87   :  { %v134_v25 = vpop.eup %133 }
  0x88   :  { %v88_v26 = vadd.f32 1.0, %v134_v25 }
  0x8a   :  { %135 = vrcp.f32 %v88_v26  ;;  %vm94_vm0 = vweird.f32 %v88_v26  ;;  %v100_v31 = vand.u32 2147483648, %v88_v26  ;;  %v98_v33 = vand.u32 2147483647, %v88_v26 }
  0x8c   :  { %v101_v35 = vor.u32 1.1754944e-38, %v100_v31  ;;  %vm99_vm3 = vcmp.eq.f32.partialorder %v98_v33, 8.507059e+37 }
  0x90   :  { %v136_v27 = vpop.eup %135 }
  0x91   :  { %v90_v28 = vmul.f32 %v136_v27, %v88_v26  ;;  %vm95_vm1 = vweird.f32 %v136_v27 }
  0x92   :  { %vm96_vm2 = vmor %vm94_vm0, %vm95_vm1 }
  0x93   :  { %v91_v29 = vsub.f32 1.0, %v90_v28 }
  0x95   :  { %v92_v30 = vmul.f32 %v136_v27, %v91_v29 }
  0x97   :  { %v93_v32 = vadd.f32 %v136_v27, %v92_v30 }
  0x99   :  { %v97_v36 = vsel %vm96_vm2, %v136_v27, %v93_v32 }
  0x9a   :  { %v102_v39 = vsel %vm99_vm3, %v101_v35, %v97_v36 }
  0xa3   :  { %v70_v37 = vpop.f32.mrf.mxu0 }
  0xa4   :  { %v71_v38 = vadd.f32 %v132_v34, %v70_v37 }
  0xa6   :  { %v104_v40 = vmul.f32 %v102_v39, %v71_v38 }
  0xa8   :  { %105 = vst [vmem:[#allocation5] sm:$0xff] %v104_v40 }
  0xa9   :  { %116 = dma.vmem_to_hbm [thread:$0]  %s112_s30, 128, %s114_s7, [#allocation4]  }
  0xaa   :  { %187 = dma.done.wait [#allocation4], 128  }
  0xab   :  { %188 = vsyncadd [#allocation4], 4294967168 }
  0xac   :  { %121 = vsyncpa [#allocation3], 1 }
  0xad   :  { %122 = vsyncpa [#allocation4], 1 }

</bundles_post_ra>
